<compile_context>
chip_gen: v6e
topology: v6e:2x2x1
jax: 0.10.0
libtpu: 0.0.40
codegen_flags: <defaults>
</compile_context>

<pallas_src>
import functools

import jax
import jax.numpy as jnp
from jax import lax
from jax.experimental import pallas as pl
from jax.experimental.pallas import tpu as pltpu

BN_EPS = 1e-5
LANE = 128


def nir_se_basic_block_kernel(
    x_ref,        # (C_in, NLpad)   f32   (conv1 input + residual; aliased to output)
    w1_ref,       # (C_out, K*C_in) bf16  im2col conv1 weight
    w2_ref,       # (C_out, K*C_out)bf16  im2col conv2 weight
    wf1_ref,      # (C_r, C_out)    bf16  SE fc1 weight
    wf2_ref,      # (C_out, C_r)    bf16  SE fc2 weight
    pv_ref,       # (C_out, 8)      f32   packed per-channel params (see wrapper)
    out_ref,      # (C_out, NLpad)  f32
    *, n_batch, seq_len, n_valid, c_r, ksize,
):
    nlpad = x_ref.shape[1]
    inv_cnt = 1.0 / float(n_valid)
    inv_len = 1.0 / float(seq_len)

    x2d = x_ref[...]

    # ---- unpack the consolidated per-channel parameter table ----
    pv = pv_ref[...]
    b1, g1, be1 = pv[:, 0:1], pv[:, 1:2], pv[:, 2:3]
    b2, g2, be2 = pv[:, 3:4], pv[:, 4:5], pv[:, 5:6]
    bf2 = pv[:, 6:7]
    bf1 = pv[0:c_r, 7:8]

    # ---- lane coordinate system, generated in-kernel (no aux DMA) ----
    # j      : merged-lane index            (1, NLpad)
    # samp   : sample id   = j // L         (exact integer values in f32)
    # lpos   : in-sample l = j mod L
    j = lax.broadcasted_iota(jnp.int32, (1, nlpad), 1).astype(jnp.float32)
    samp = jnp.floor((j + 0.5) * inv_len)
    lpos = j - samp * float(seq_len)
    lane_valid = j < float(n_valid)

    # ---- conv as one im2col matmul; per-tap masks kill cross-sample leakage
    #      of the lane roll and the pad lanes ----
    def conv1d(h, w_col, bias):
        p = ksize // 2
        cols = []
        for k in range(ksize):                     # static, tiny (e.g. 3)
            d = k - p
            sh = h if d == 0 else pltpu.roll(h, shift=(-d) % nlpad, axis=1)
            m = lane_valid & (lpos + float(d) >= 0.0) & (lpos + float(d) <= float(seq_len - 1))
            cols.append(jnp.where(m, sh, 0.0).astype(jnp.bfloat16))
        # TODO(synk): for C_in/C_out >= 128, accumulate K per-tap matmuls instead
        # of materializing the concatenated im2col buffer.
        xcol = jnp.concatenate(cols, axis=0)       # (K*C, NLpad) bf16
        return jnp.dot(w_col, xcol, preferred_element_type=jnp.float32) + bias

    # ---- BatchNorm1d training-mode batch stats, single fused pass ----
    # E[x^2]-E[x]^2 form (f32 accumulation); normalization is one fma.
    def bn_train(h, gamma, beta):
        hm = jnp.where(lane_valid, h, 0.0)
        mean = jnp.sum(hm, axis=1, keepdims=True) * inv_cnt
        msq = jnp.sum(hm * hm, axis=1, keepdims=True) * inv_cnt
        var = msq - mean * mean
        scale = gamma * lax.rsqrt(var + BN_EPS)
        return h * scale + (beta - mean * scale)

    # conv1 -> bn1 -> relu
    h = jnp.maximum(bn_train(conv1d(x2d, w1_ref[...], b1), g1, be1), 0.0)
    # conv2 -> bn2
    h = bn_train(conv1d(h, w2_ref[...], b2), g2, be2)

    # ---- SE block, batched over N on the lane axis ----
    # Per-sample average pool = one long-contraction bf16 MXU matmul against an
    # in-kernel generated {0,1} mask (pad rows fall outside any sample id).
    rowf = lax.broadcasted_iota(jnp.int32, (nlpad, n_batch), 0).astype(jnp.float32)
    colf = lax.broadcasted_iota(jnp.int32, (nlpad, n_batch), 1).astype(jnp.float32)
    pool = jnp.where(jnp.floor((rowf + 0.5) * inv_len) == colf, 1.0, 0.0).astype(jnp.bfloat16)
    s = jnp.dot(h.astype(jnp.bfloat16), pool,
                preferred_element_type=jnp.float32) * inv_len            # (C_out, N)
    z = jnp.maximum(
        jnp.dot(wf1_ref[...], s.astype(jnp.bfloat16),
                preferred_element_type=jnp.float32) + bf1, 0.0)          # (C_r, N)
    gate = jax.nn.sigmoid(
        jnp.dot(wf2_ref[...], z.astype(jnp.bfloat16),
                preferred_element_type=jnp.float32) + bf2)               # (C_out, N)

    # Gate broadcast back to the merged lanes on the VPU (a matmul here would
    # have contraction depth N — pure MXU push/pop overhead for small N).
    gate_full = jnp.where(samp == 0.0, gate[:, 0:1], 0.0)
    for n in range(1, n_batch):                                          # static, small
        gate_full = jnp.where(samp == float(n), gate[:, n:n + 1], gate_full)

    # ---- scale + residual (short is None => residual = input) ----
    # Pad lanes are zeroed so the merged layout can be chained across blocks.
    # TODO(synk): BatchNorm running-stat updates (training side effect) are not emitted.
    out_ref[...] = jnp.where(lane_valid, h * gate_full + x2d, 0.0)


def nir_se_basic_block(x, params):
    """Wrapper: layout plumbing (merge N into lanes, pad to 128) + pallas_call."""
    N, C_in, L = x.shape
    w1 = params["conv1_w"]
    C_out, _, K = w1.shape
    C_r = params["fc1_w"].shape[0]
    assert K % 2 == 1, "padding = K//2 is 'same' only for odd kernel sizes"
    assert C_in == C_out, "short=None requires in_channel == out_channel"

    NL = N * L
    NLpad = ((NL + LANE - 1) // LANE) * LANE

    # merge batch into the lane axis: (N, C, L) -> (C, N*L) -> pad lanes to NLpad
    x2d = jnp.transpose(x, (1, 0, 2)).reshape(C_in, NL).astype(jnp.float32)
    x2d = jnp.pad(x2d, ((0, 0), (0, NLpad - NL)))

    # im2col weight layout: w_col[co, k*C_in + ci] = W[co, ci, k]
    w1_col = jnp.transpose(w1, (0, 2, 1)).reshape(C_out, K * C_in).astype(jnp.bfloat16)
    w2_col = jnp.transpose(params["conv2_w"], (0, 2, 1)).reshape(
        C_out, K * C_out).astype(jnp.bfloat16)
    wf1 = params["fc1_w"][:, :, 0].astype(jnp.bfloat16)
    wf2 = params["fc2_w"][:, :, 0].astype(jnp.bfloat16)

    # Pack all per-channel vectors into ONE (C_out, 8) f32 array (one DMA):
    # cols: 0=conv1_b 1=bn1_g 2=bn1_b 3=conv2_b 4=bn2_g 5=bn2_b 6=fc2_b 7=fc1_b(rows 0:C_r)
    pvec = jnp.zeros((C_out, 8), jnp.float32)
    pvec = pvec.at[:, 0].set(params["conv1_b"])
    pvec = pvec.at[:, 1].set(params["bn1_g"])
    pvec = pvec.at[:, 2].set(params["bn1_b"])
    pvec = pvec.at[:, 3].set(params["conv2_b"])
    pvec = pvec.at[:, 4].set(params["bn2_g"])
    pvec = pvec.at[:, 5].set(params["bn2_b"])
    pvec = pvec.at[:, 6].set(params["fc2_b"])
    pvec = pvec.at[:C_r, 7].set(params["fc1_b"])

    kernel = functools.partial(
        nir_se_basic_block_kernel,
        n_batch=N, seq_len=L, n_valid=NL, c_r=C_r, ksize=K)

    cost = pl.CostEstimate(
        flops=int(2 * NLpad * C_out * K * (C_in + C_out)      # two convs
                  + 2 * NLpad * C_out * N                     # SE pooling
                  + 4 * C_out * C_r * N                       # fc1 + fc2
                  + 12 * NLpad * C_out),                      # elementwise-ish
        transcendentals=int(C_out * N + 2 * C_out),
        bytes_accessed=int(4 * NLpad * (C_in + C_out)
                           + 2 * K * C_out * (C_in + C_out)
                           + 2 * 2 * C_out * C_r
                           + 4 * C_out * 8),
    )

    vmem = pl.BlockSpec(memory_space=pltpu.MemorySpace.VMEM)
    out2d = pl.pallas_call(
        kernel,
        out_shape=jax.ShapeDtypeStruct((C_out, NLpad), jnp.float32),
        in_specs=[vmem] * 6,
        out_specs=vmem,
        input_output_aliases={0: 0},          # reuse the x buffer for the output
        cost_estimate=cost,
        compiler_params=pltpu.CompilerParams(vmem_limit_bytes=64 * 1024 * 1024),
    )(x2d, w1_col, w2_col, wf1, wf2, pvec)

    # back to (N, C, L)  (keep the merged layout across blocks in a real stack)
    return jnp.transpose(out2d[:, :NL].reshape(C_out, N, L), (1, 0, 2))


# ----------------------------- parameter init -----------------------------
def init_params(key, c_in, c_out, reduction, k):
    ks = jax.random.split(key, 12)
    cr = c_out // reduction

    def u(kk, shape, fan_in):
        bound = 1.0 / (fan_in ** 0.5)
        return jax.random.uniform(kk, shape, jnp.float32, -bound, bound)

    return dict(
        conv1_w=u(ks[0], (c_out, c_in, k), c_in * k),
        conv1_b=u(ks[1], (c_out,), c_in * k),
        bn1_g=1.0 + 0.1 * jax.random.normal(ks[2], (c_out,), jnp.float32),
        bn1_b=0.1 * jax.random.normal(ks[3], (c_out,), jnp.float32),
        conv2_w=u(ks[4], (c_out, c_out, k), c_out * k),
        conv2_b=u(ks[5], (c_out,), c_out * k),
        bn2_g=1.0 + 0.1 * jax.random.normal(ks[6], (c_out,), jnp.float32),
        bn2_b=0.1 * jax.random.normal(ks[7], (c_out,), jnp.float32),
        fc1_w=u(ks[8], (cr, c_out, 1), c_out),
        fc1_b=u(ks[9], (cr,), c_out),
        fc2_w=u(ks[10], (c_out, cr, 1), cr),
        fc2_b=u(ks[11], (c_out,), cr),
    )


# --------------- pure-JAX reference (same bf16 MXU operand dtypes) ---------------
def reference(x, p):
    K = p["conv1_w"].shape[-1]
    P = K // 2
    bf = jnp.bfloat16

    def conv(h, w, b):
        y = jax.lax.conv_general_dilated(
            h.astype(bf), w.astype(bf), window_strides=(1,), padding=[(P, P)],
            dimension_numbers=("NCH", "OIH", "NCH"),
            preferred_element_type=jnp.float32)
        return y + b[None, :, None]

    def bn(h, g, b):
        m = jnp.mean(h, axis=(0, 2), keepdims=True)
        v = jnp.mean((h - m) ** 2, axis=(0, 2), keepdims=True)
        return (h - m) / jnp.sqrt(v + BN_EPS) * g[None, :, None] + b[None, :, None]

    h = jax.nn.relu(bn(conv(x, p["conv1_w"], p["conv1_b"]), p["bn1_g"], p["bn1_b"]))
    h = bn(conv(h, p["conv2_w"], p["conv2_b"]), p["bn2_g"], p["bn2_b"])
    # pooling on bf16-cast h (matches the kernel's bf16 MXU pooling operand)
    s = jnp.mean(h.astype(bf).astype(jnp.float32), axis=2)             # (N, C)
    z = jax.nn.relu(
        jnp.dot(s.astype(bf), p["fc1_w"][:, :, 0].T.astype(bf),
                preferred_element_type=jnp.float32) + p["fc1_b"])
    g = jax.nn.sigmoid(
        jnp.dot(z.astype(bf), p["fc2_w"][:, :, 0].T.astype(bf),
                preferred_element_type=jnp.float32) + p["fc2_b"])
    return h * g[:, :, None] + x


if __name__ == "__main__":
    N, C, L = 2, 8, 16          # in_channel == out_channel (short=None)
    reduction, conv_fsize = 4, 3

    key = jax.random.PRNGKey(0)
    kx, kp = jax.random.split(key)
    x = jax.random.normal(kx, (N, C, L), jnp.float32)
    params = init_params(kp, C, C, reduction, conv_fsize)

    out = jax.block_until_ready(jax.jit(nir_se_basic_block)(x, params))
    ref = jax.block_until_ready(reference(x, params))

    assert out.shape == (N, C, L), out.shape
    # bf16 MXU operands on both sides; remaining diff is f32 accumulation-order noise.
    assert jnp.allclose(out, ref, rtol=5e-3, atol=5e-3), float(jnp.max(jnp.abs(out - ref)))
    print("KERNEL_OK")
</pallas_src>

<mosaic_0001>
module attributes {stable_mosaic.version = 11 : i64} {
  func.func @nir_se_basic_block_kernel(%arg0: memref<8x128xf32, #tpu.memory_space<vmem>>, %arg1: memref<8x24xbf16, #tpu.memory_space<vmem>>, %arg2: memref<8x24xbf16, #tpu.memory_space<vmem>>, %arg3: memref<2x8xbf16, #tpu.memory_space<vmem>>, %arg4: memref<8x2xbf16, #tpu.memory_space<vmem>>, %arg5: memref<8x8xf32, #tpu.memory_space<vmem>>, %arg6: memref<8x128xf32, #tpu.memory_space<vmem>>) attributes {dimension_semantics = [], scalar_prefetch = 0 : i64, scratch_operands = 0 : i64, tpu.core_type = #tpu.core_type<tc>} {
    %c0 = arith.constant 0 : index
    %c0_0 = arith.constant 0 : index
    %0 = vector.load %arg0[%c0, %c0_0] : memref<8x128xf32, #tpu.memory_space<vmem>>, vector<8x128xf32>
    %c0_1 = arith.constant 0 : index
    %c0_2 = arith.constant 0 : index
    %1 = vector.load %arg5[%c0_1, %c0_2] : memref<8x8xf32, #tpu.memory_space<vmem>>, vector<8x8xf32>
    %2 = vector.extract_strided_slice %1 {offsets = [0, 0], sizes = [8, 1], strides = [1, 1]} : vector<8x8xf32> to vector<8x1xf32>
    %3 = vector.extract_strided_slice %1 {offsets = [0, 1], sizes = [8, 1], strides = [1, 1]} : vector<8x8xf32> to vector<8x1xf32>
    %4 = vector.extract_strided_slice %1 {offsets = [0, 2], sizes = [8, 1], strides = [1, 1]} : vector<8x8xf32> to vector<8x1xf32>
    %5 = vector.extract_strided_slice %1 {offsets = [0, 3], sizes = [8, 1], strides = [1, 1]} : vector<8x8xf32> to vector<8x1xf32>
    %6 = vector.extract_strided_slice %1 {offsets = [0, 4], sizes = [8, 1], strides = [1, 1]} : vector<8x8xf32> to vector<8x1xf32>
    %7 = vector.extract_strided_slice %1 {offsets = [0, 5], sizes = [8, 1], strides = [1, 1]} : vector<8x8xf32> to vector<8x1xf32>
    %8 = vector.extract_strided_slice %1 {offsets = [0, 6], sizes = [8, 1], strides = [1, 1]} : vector<8x8xf32> to vector<8x1xf32>
    %9 = vector.extract_strided_slice %1 {offsets = [0, 7], sizes = [2, 1], strides = [1, 1]} : vector<8x8xf32> to vector<2x1xf32>
    %10 = tpu.iota {dimensions = array<i32: 1>} : vector<1x128xi32>
    %11 = arith.sitofp %10 : vector<1x128xi32> to vector<1x128xf32>
    %cst = arith.constant 5.000000e-01 : f32
    %12 = vector.broadcast %cst : f32 to vector<1x128xf32>
    %13 = arith.addf %11, %12 : vector<1x128xf32>
    %cst_3 = arith.constant 6.250000e-02 : f32
    %14 = vector.broadcast %cst_3 : f32 to vector<1x128xf32>
    %15 = arith.mulf %13, %14 : vector<1x128xf32>
    %16 = math.floor %15 : vector<1x128xf32>
    %cst_4 = arith.constant 1.600000e+01 : f32
    %17 = vector.broadcast %cst_4 : f32 to vector<1x128xf32>
    %18 = arith.mulf %16, %17 : vector<1x128xf32>
    %19 = arith.subf %11, %18 : vector<1x128xf32>
    %cst_5 = arith.constant 3.200000e+01 : f32
    %20 = vector.broadcast %cst_5 : f32 to vector<1x128xf32>
    %21 = arith.cmpf olt, %11, %20 : vector<1x128xf32>
    %c0_6 = arith.constant 0 : index
    %c0_7 = arith.constant 0 : index
    %22 = vector.load %arg1[%c0_6, %c0_7] : memref<8x24xbf16, #tpu.memory_space<vmem>>, vector<8x24xbf16>
    %c1_i32 = arith.constant 1 : i32
    %23 = tpu.dynamic_rotate %0 by %c1_i32 dim 1 : vector<8x128xf32>, i32 -> vector<8x128xf32>
    %cst_8 = arith.constant -1.000000e+00 : f32
    %24 = vector.broadcast %cst_8 : f32 to vector<1x128xf32>
    %25 = arith.addf %19, %24 : vector<1x128xf32>
    %cst_9 = arith.constant 0.000000e+00 : f32
    %26 = vector.broadcast %cst_9 : f32 to vector<1x128xf32>
    %27 = arith.cmpf oge, %25, %26 : vector<1x128xf32>
    %28 = arith.andi %21, %27 : vector<1x128xi1>
    %cst_10 = arith.constant -1.000000e+00 : f32
    %29 = vector.broadcast %cst_10 : f32 to vector<1x128xf32>
    %30 = arith.addf %19, %29 : vector<1x128xf32>
    %cst_11 = arith.constant 1.500000e+01 : f32
    %31 = vector.broadcast %cst_11 : f32 to vector<1x128xf32>
    %32 = arith.cmpf ole, %30, %31 : vector<1x128xf32>
    %33 = arith.andi %28, %32 : vector<1x128xi1>
    %cst_12 = arith.constant 0.000000e+00 : f32
    %34 = vector.shape_cast %33 : vector<1x128xi1> to vector<1x128xi1>
    %35 = vector.broadcast %34 : vector<1x128xi1> to vector<8x128xi1>
    %36 = vector.broadcast %cst_12 : f32 to vector<8x128xf32>
    %37 = arith.select %35, %23, %36 : vector<8x128xi1>, vector<8x128xf32>
    %38 = arith.truncf %37 : vector<8x128xf32> to vector<8x128xbf16>
    %cst_13 = arith.constant 0.000000e+00 : f32
    %39 = vector.broadcast %cst_13 : f32 to vector<1x128xf32>
    %40 = arith.addf %19, %39 : vector<1x128xf32>
    %cst_14 = arith.constant 0.000000e+00 : f32
    %41 = vector.broadcast %cst_14 : f32 to vector<1x128xf32>
    %42 = arith.cmpf oge, %40, %41 : vector<1x128xf32>
    %43 = arith.andi %21, %42 : vector<1x128xi1>
    %cst_15 = arith.constant 0.000000e+00 : f32
    %44 = vector.broadcast %cst_15 : f32 to vector<1x128xf32>
    %45 = arith.addf %19, %44 : vector<1x128xf32>
    %cst_16 = arith.constant 1.500000e+01 : f32
    %46 = vector.broadcast %cst_16 : f32 to vector<1x128xf32>
    %47 = arith.cmpf ole, %45, %46 : vector<1x128xf32>
    %48 = arith.andi %43, %47 : vector<1x128xi1>
    %cst_17 = arith.constant 0.000000e+00 : f32
    %49 = vector.shape_cast %48 : vector<1x128xi1> to vector<1x128xi1>
    %50 = vector.broadcast %49 : vector<1x128xi1> to vector<8x128xi1>
    %51 = vector.broadcast %cst_17 : f32 to vector<8x128xf32>
    %52 = arith.select %50, %0, %51 : vector<8x128xi1>, vector<8x128xf32>
    %53 = arith.truncf %52 : vector<8x128xf32> to vector<8x128xbf16>
    %c127_i32 = arith.constant 127 : i32
    %54 = tpu.dynamic_rotate %0 by %c127_i32 dim 1 : vector<8x128xf32>, i32 -> vector<8x128xf32>
    %cst_18 = arith.constant 1.000000e+00 : f32
    %55 = vector.broadcast %cst_18 : f32 to vector<1x128xf32>
    %56 = arith.addf %19, %55 : vector<1x128xf32>
    %cst_19 = arith.constant 0.000000e+00 : f32
    %57 = vector.broadcast %cst_19 : f32 to vector<1x128xf32>
    %58 = arith.cmpf oge, %56, %57 : vector<1x128xf32>
    %59 = arith.andi %21, %58 : vector<1x128xi1>
    %cst_20 = arith.constant 1.000000e+00 : f32
    %60 = vector.broadcast %cst_20 : f32 to vector<1x128xf32>
    %61 = arith.addf %19, %60 : vector<1x128xf32>
    %cst_21 = arith.constant 1.500000e+01 : f32
    %62 = vector.broadcast %cst_21 : f32 to vector<1x128xf32>
    %63 = arith.cmpf ole, %61, %62 : vector<1x128xf32>
    %64 = arith.andi %59, %63 : vector<1x128xi1>
    %cst_22 = arith.constant 0.000000e+00 : f32
    %65 = vector.shape_cast %64 : vector<1x128xi1> to vector<1x128xi1>
    %66 = vector.broadcast %65 : vector<1x128xi1> to vector<8x128xi1>
    %67 = vector.broadcast %cst_22 : f32 to vector<8x128xf32>
    %68 = arith.select %66, %54, %67 : vector<8x128xi1>, vector<8x128xf32>
    %69 = arith.truncf %68 : vector<8x128xf32> to vector<8x128xbf16>
    %70 = tpu.concatenate %38, %53, %69 in 0 : vector<8x128xbf16>, vector<8x128xbf16>, vector<8x128xbf16> -> vector<24x128xbf16>
    %cst_23 = arith.constant dense<0.000000e+00> : vector<8x128xf32>
    %71 = tpu.matmul %22, %70, %cst_23 {dimension_numbers = #tpu.dot_dimension_numbers<[1], [0], [0], [1], [0, 0, 1, 1], [], []>} : vector<8x24xbf16>, vector<24x128xbf16>, vector<8x128xf32> -> vector<8x128xf32>
    %72 = vector.broadcast %2 : vector<8x1xf32> to vector<8x128xf32>
    %73 = arith.addf %71, %72 : vector<8x128xf32>
    %cst_24 = arith.constant 0.000000e+00 : f32
    %74 = vector.shape_cast %21 : vector<1x128xi1> to vector<1x128xi1>
    %75 = vector.broadcast %74 : vector<1x128xi1> to vector<8x128xi1>
    %76 = vector.broadcast %cst_24 : f32 to vector<8x128xf32>
    %77 = arith.select %75, %73, %76 : vector<8x128xi1>, vector<8x128xf32>
    %cst_25 = arith.constant dense<0.000000e+00> : vector<8xf32>
    %78 = vector.multi_reduction <add>, %77, %cst_25 [1] : vector<8x128xf32> to vector<8xf32>
    %79 = vector.shape_cast %78 : vector<8xf32> to vector<8x1xf32>
    %cst_26 = arith.constant 3.125000e-02 : f32
    %80 = vector.broadcast %cst_26 : f32 to vector<8x1xf32>
    %81 = arith.mulf %79, %80 : vector<8x1xf32>
    %82 = arith.mulf %77, %77 : vector<8x128xf32>
    %cst_27 = arith.constant dense<0.000000e+00> : vector<8xf32>
    %83 = vector.multi_reduction <add>, %82, %cst_27 [1] : vector<8x128xf32> to vector<8xf32>
    %84 = vector.shape_cast %83 : vector<8xf32> to vector<8x1xf32>
    %cst_28 = arith.constant 3.125000e-02 : f32
    %85 = vector.broadcast %cst_28 : f32 to vector<8x1xf32>
    %86 = arith.mulf %84, %85 : vector<8x1xf32>
    %87 = arith.mulf %81, %81 : vector<8x1xf32>
    %88 = arith.subf %86, %87 : vector<8x1xf32>
    %cst_29 = arith.constant 9.99999974E-6 : f32
    %89 = vector.broadcast %cst_29 : f32 to vector<8x1xf32>
    %90 = arith.addf %88, %89 : vector<8x1xf32>
    %91 = math.rsqrt %90 : vector<8x1xf32>
    %92 = arith.mulf %3, %91 : vector<8x1xf32>
    %93 = vector.broadcast %92 : vector<8x1xf32> to vector<8x128xf32>
    %94 = arith.mulf %73, %93 : vector<8x128xf32>
    %95 = arith.mulf %81, %92 : vector<8x1xf32>
    %96 = arith.subf %4, %95 : vector<8x1xf32>
    %97 = vector.broadcast %96 : vector<8x1xf32> to vector<8x128xf32>
    %98 = arith.addf %94, %97 : vector<8x128xf32>
    %cst_30 = arith.constant 0.000000e+00 : f32
    %99 = vector.broadcast %cst_30 : f32 to vector<8x128xf32>
    %100 = arith.maximumf %98, %99 : vector<8x128xf32>
    %c0_31 = arith.constant 0 : index
    %c0_32 = arith.constant 0 : index
    %101 = vector.load %arg2[%c0_31, %c0_32] : memref<8x24xbf16, #tpu.memory_space<vmem>>, vector<8x24xbf16>
    %c1_i32_33 = arith.constant 1 : i32
    %102 = tpu.dynamic_rotate %100 by %c1_i32_33 dim 1 : vector<8x128xf32>, i32 -> vector<8x128xf32>
    %cst_34 = arith.constant -1.000000e+00 : f32
    %103 = vector.broadcast %cst_34 : f32 to vector<1x128xf32>
    %104 = arith.addf %19, %103 : vector<1x128xf32>
    %cst_35 = arith.constant 0.000000e+00 : f32
    %105 = vector.broadcast %cst_35 : f32 to vector<1x128xf32>
    %106 = arith.cmpf oge, %104, %105 : vector<1x128xf32>
    %107 = arith.andi %21, %106 : vector<1x128xi1>
    %cst_36 = arith.constant -1.000000e+00 : f32
    %108 = vector.broadcast %cst_36 : f32 to vector<1x128xf32>
    %109 = arith.addf %19, %108 : vector<1x128xf32>
    %cst_37 = arith.constant 1.500000e+01 : f32
    %110 = vector.broadcast %cst_37 : f32 to vector<1x128xf32>
    %111 = arith.cmpf ole, %109, %110 : vector<1x128xf32>
    %112 = arith.andi %107, %111 : vector<1x128xi1>
    %cst_38 = arith.constant 0.000000e+00 : f32
    %113 = vector.shape_cast %112 : vector<1x128xi1> to vector<1x128xi1>
    %114 = vector.broadcast %113 : vector<1x128xi1> to vector<8x128xi1>
    %115 = vector.broadcast %cst_38 : f32 to vector<8x128xf32>
    %116 = arith.select %114, %102, %115 : vector<8x128xi1>, vector<8x128xf32>
    %117 = arith.truncf %116 : vector<8x128xf32> to vector<8x128xbf16>
    %cst_39 = arith.constant 0.000000e+00 : f32
    %118 = vector.broadcast %cst_39 : f32 to vector<1x128xf32>
    %119 = arith.addf %19, %118 : vector<1x128xf32>
    %cst_40 = arith.constant 0.000000e+00 : f32
    %120 = vector.broadcast %cst_40 : f32 to vector<1x128xf32>
    %121 = arith.cmpf oge, %119, %120 : vector<1x128xf32>
    %122 = arith.andi %21, %121 : vector<1x128xi1>
    %cst_41 = arith.constant 0.000000e+00 : f32
    %123 = vector.broadcast %cst_41 : f32 to vector<1x128xf32>
    %124 = arith.addf %19, %123 : vector<1x128xf32>
    %cst_42 = arith.constant 1.500000e+01 : f32
    %125 = vector.broadcast %cst_42 : f32 to vector<1x128xf32>
    %126 = arith.cmpf ole, %124, %125 : vector<1x128xf32>
    %127 = arith.andi %122, %126 : vector<1x128xi1>
    %cst_43 = arith.constant 0.000000e+00 : f32
    %128 = vector.shape_cast %127 : vector<1x128xi1> to vector<1x128xi1>
    %129 = vector.broadcast %128 : vector<1x128xi1> to vector<8x128xi1>
    %130 = vector.broadcast %cst_43 : f32 to vector<8x128xf32>
    %131 = arith.select %129, %100, %130 : vector<8x128xi1>, vector<8x128xf32>
    %132 = arith.truncf %131 : vector<8x128xf32> to vector<8x128xbf16>
    %c127_i32_44 = arith.constant 127 : i32
    %133 = tpu.dynamic_rotate %100 by %c127_i32_44 dim 1 : vector<8x128xf32>, i32 -> vector<8x128xf32>
    %cst_45 = arith.constant 1.000000e+00 : f32
    %134 = vector.broadcast %cst_45 : f32 to vector<1x128xf32>
    %135 = arith.addf %19, %134 : vector<1x128xf32>
    %cst_46 = arith.constant 0.000000e+00 : f32
    %136 = vector.broadcast %cst_46 : f32 to vector<1x128xf32>
    %137 = arith.cmpf oge, %135, %136 : vector<1x128xf32>
    %138 = arith.andi %21, %137 : vector<1x128xi1>
    %cst_47 = arith.constant 1.000000e+00 : f32
    %139 = vector.broadcast %cst_47 : f32 to vector<1x128xf32>
    %140 = arith.addf %19, %139 : vector<1x128xf32>
    %cst_48 = arith.constant 1.500000e+01 : f32
    %141 = vector.broadcast %cst_48 : f32 to vector<1x128xf32>
    %142 = arith.cmpf ole, %140, %141 : vector<1x128xf32>
    %143 = arith.andi %138, %142 : vector<1x128xi1>
    %cst_49 = arith.constant 0.000000e+00 : f32
    %144 = vector.shape_cast %143 : vector<1x128xi1> to vector<1x128xi1>
    %145 = vector.broadcast %144 : vector<1x128xi1> to vector<8x128xi1>
    %146 = vector.broadcast %cst_49 : f32 to vector<8x128xf32>
    %147 = arith.select %145, %133, %146 : vector<8x128xi1>, vector<8x128xf32>
    %148 = arith.truncf %147 : vector<8x128xf32> to vector<8x128xbf16>
    %149 = tpu.concatenate %117, %132, %148 in 0 : vector<8x128xbf16>, vector<8x128xbf16>, vector<8x128xbf16> -> vector<24x128xbf16>
    %cst_50 = arith.constant dense<0.000000e+00> : vector<8x128xf32>
    %150 = tpu.matmul %101, %149, %cst_50 {dimension_numbers = #tpu.dot_dimension_numbers<[1], [0], [0], [1], [0, 0, 1, 1], [], []>} : vector<8x24xbf16>, vector<24x128xbf16>, vector<8x128xf32> -> vector<8x128xf32>
    %151 = vector.broadcast %5 : vector<8x1xf32> to vector<8x128xf32>
    %152 = arith.addf %150, %151 : vector<8x128xf32>
    %cst_51 = arith.constant 0.000000e+00 : f32
    %153 = vector.shape_cast %21 : vector<1x128xi1> to vector<1x128xi1>
    %154 = vector.broadcast %153 : vector<1x128xi1> to vector<8x128xi1>
    %155 = vector.broadcast %cst_51 : f32 to vector<8x128xf32>
    %156 = arith.select %154, %152, %155 : vector<8x128xi1>, vector<8x128xf32>
    %cst_52 = arith.constant dense<0.000000e+00> : vector<8xf32>
    %157 = vector.multi_reduction <add>, %156, %cst_52 [1] : vector<8x128xf32> to vector<8xf32>
    %158 = vector.shape_cast %157 : vector<8xf32> to vector<8x1xf32>
    %cst_53 = arith.constant 3.125000e-02 : f32
    %159 = vector.broadcast %cst_53 : f32 to vector<8x1xf32>
    %160 = arith.mulf %158, %159 : vector<8x1xf32>
    %161 = arith.mulf %156, %156 : vector<8x128xf32>
    %cst_54 = arith.constant dense<0.000000e+00> : vector<8xf32>
    %162 = vector.multi_reduction <add>, %161, %cst_54 [1] : vector<8x128xf32> to vector<8xf32>
    %163 = vector.shape_cast %162 : vector<8xf32> to vector<8x1xf32>
    %cst_55 = arith.constant 3.125000e-02 : f32
    %164 = vector.broadcast %cst_55 : f32 to vector<8x1xf32>
    %165 = arith.mulf %163, %164 : vector<8x1xf32>
    %166 = arith.mulf %160, %160 : vector<8x1xf32>
    %167 = arith.subf %165, %166 : vector<8x1xf32>
    %cst_56 = arith.constant 9.99999974E-6 : f32
    %168 = vector.broadcast %cst_56 : f32 to vector<8x1xf32>
    %169 = arith.addf %167, %168 : vector<8x1xf32>
    %170 = math.rsqrt %169 : vector<8x1xf32>
    %171 = arith.mulf %6, %170 : vector<8x1xf32>
    %172 = vector.broadcast %171 : vector<8x1xf32> to vector<8x128xf32>
    %173 = arith.mulf %152, %172 : vector<8x128xf32>
    %174 = arith.mulf %160, %171 : vector<8x1xf32>
    %175 = arith.subf %7, %174 : vector<8x1xf32>
    %176 = vector.broadcast %175 : vector<8x1xf32> to vector<8x128xf32>
    %177 = arith.addf %173, %176 : vector<8x128xf32>
    %178 = tpu.iota {dimensions = array<i32: 0>} : vector<128x2xi32>
    %179 = arith.sitofp %178 : vector<128x2xi32> to vector<128x2xf32>
    %180 = tpu.iota {dimensions = array<i32: 1>} : vector<128x2xi32>
    %181 = arith.sitofp %180 : vector<128x2xi32> to vector<128x2xf32>
    %cst_57 = arith.constant 5.000000e-01 : f32
    %182 = vector.broadcast %cst_57 : f32 to vector<128x2xf32>
    %183 = arith.addf %179, %182 : vector<128x2xf32>
    %cst_58 = arith.constant 6.250000e-02 : f32
    %184 = vector.broadcast %cst_58 : f32 to vector<128x2xf32>
    %185 = arith.mulf %183, %184 : vector<128x2xf32>
    %186 = math.floor %185 : vector<128x2xf32>
    %187 = arith.cmpf oeq, %186, %181 : vector<128x2xf32>
    %cst_59 = arith.constant 1.000000e+00 : f32
    %cst_60 = arith.constant 0.000000e+00 : f32
    %188 = vector.broadcast %cst_59 : f32 to vector<128x2xf32>
    %189 = vector.broadcast %cst_60 : f32 to vector<128x2xf32>
    %190 = arith.select %187, %188, %189 : vector<128x2xi1>, vector<128x2xf32>
    %191 = arith.truncf %190 : vector<128x2xf32> to vector<128x2xbf16>
    %192 = arith.truncf %177 : vector<8x128xf32> to vector<8x128xbf16>
    %cst_61 = arith.constant dense<0.000000e+00> : vector<8x2xf32>
    %193 = tpu.matmul %192, %191, %cst_61 {dimension_numbers = #tpu.dot_dimension_numbers<[1], [0], [0], [1], [0, 0, 1, 1], [], []>} : vector<8x128xbf16>, vector<128x2xbf16>, vector<8x2xf32> -> vector<8x2xf32>
    %cst_62 = arith.constant 6.250000e-02 : f32
    %194 = vector.broadcast %cst_62 : f32 to vector<8x2xf32>
    %195 = arith.mulf %193, %194 : vector<8x2xf32>
    %c0_63 = arith.constant 0 : index
    %c0_64 = arith.constant 0 : index
    %196 = vector.load %arg3[%c0_63, %c0_64] : memref<2x8xbf16, #tpu.memory_space<vmem>>, vector<2x8xbf16>
    %197 = arith.truncf %195 : vector<8x2xf32> to vector<8x2xbf16>
    %cst_65 = arith.constant dense<0.000000e+00> : vector<2x2xf32>
    %198 = tpu.matmul %196, %197, %cst_65 {dimension_numbers = #tpu.dot_dimension_numbers<[1], [0], [0], [1], [0, 0, 1, 1], [], []>} : vector<2x8xbf16>, vector<8x2xbf16>, vector<2x2xf32> -> vector<2x2xf32>
    %199 = vector.broadcast %9 : vector<2x1xf32> to vector<2x2xf32>
    %200 = arith.addf %198, %199 : vector<2x2xf32>
    %cst_66 = arith.constant 0.000000e+00 : f32
    %201 = vector.broadcast %cst_66 : f32 to vector<2x2xf32>
    %202 = arith.maximumf %200, %201 : vector<2x2xf32>
    %c0_67 = arith.constant 0 : index
    %c0_68 = arith.constant 0 : index
    %203 = vector.load %arg4[%c0_67, %c0_68] : memref<8x2xbf16, #tpu.memory_space<vmem>>, vector<8x2xbf16>
    %204 = arith.truncf %202 : vector<2x2xf32> to vector<2x2xbf16>
    %cst_69 = arith.constant dense<0.000000e+00> : vector<8x2xf32>
    %205 = tpu.matmul %203, %204, %cst_69 {dimension_numbers = #tpu.dot_dimension_numbers<[1], [0], [0], [1], [0, 0, 1, 1], [], []>} : vector<8x2xbf16>, vector<2x2xbf16>, vector<8x2xf32> -> vector<8x2xf32>
    %206 = vector.broadcast %8 : vector<8x1xf32> to vector<8x2xf32>
    %207 = arith.addf %205, %206 : vector<8x2xf32>
    %208 = arith.negf %207 : vector<8x2xf32>
    %209 = math.exp %208 : vector<8x2xf32>
    %cst_70 = arith.constant 1.000000e+00 : f32
    %210 = vector.broadcast %cst_70 : f32 to vector<8x2xf32>
    %211 = arith.addf %210, %209 : vector<8x2xf32>
    %212 = arith.divf %210, %211 : vector<8x2xf32>
    %cst_71 = arith.constant 0.000000e+00 : f32
    %213 = vector.broadcast %cst_71 : f32 to vector<1x128xf32>
    %214 = arith.cmpf oeq, %16, %213 : vector<1x128xf32>
    %215 = vector.extract_strided_slice %212 {offsets = [0, 0], sizes = [8, 1], strides = [1, 1]} : vector<8x2xf32> to vector<8x1xf32>
    %cst_72 = arith.constant 0.000000e+00 : f32
    %216 = vector.shape_cast %214 : vector<1x128xi1> to vector<1x128xi1>
    %217 = vector.broadcast %216 : vector<1x128xi1> to vector<8x128xi1>
    %218 = vector.shape_cast %215 : vector<8x1xf32> to vector<8x1xf32>
    %219 = vector.broadcast %218 : vector<8x1xf32> to vector<8x128xf32>
    %220 = vector.broadcast %cst_72 : f32 to vector<8x128xf32>
    %221 = arith.select %217, %219, %220 : vector<8x128xi1>, vector<8x128xf32>
    %cst_73 = arith.constant 1.000000e+00 : f32
    %222 = vector.broadcast %cst_73 : f32 to vector<1x128xf32>
    %223 = arith.cmpf oeq, %16, %222 : vector<1x128xf32>
    %224 = vector.extract_strided_slice %212 {offsets = [0, 1], sizes = [8, 1], strides = [1, 1]} : vector<8x2xf32> to vector<8x1xf32>
    %225 = vector.shape_cast %223 : vector<1x128xi1> to vector<1x128xi1>
    %226 = vector.broadcast %225 : vector<1x128xi1> to vector<8x128xi1>
    %227 = vector.shape_cast %224 : vector<8x1xf32> to vector<8x1xf32>
    %228 = vector.broadcast %227 : vector<8x1xf32> to vector<8x128xf32>
    %229 = arith.select %226, %228, %221 : vector<8x128xi1>, vector<8x128xf32>
    %230 = arith.mulf %177, %229 : vector<8x128xf32>
    %231 = arith.addf %230, %0 : vector<8x128xf32>
    %cst_74 = arith.constant 0.000000e+00 : f32
    %232 = vector.shape_cast %21 : vector<1x128xi1> to vector<1x128xi1>
    %233 = vector.broadcast %232 : vector<1x128xi1> to vector<8x128xi1>
    %234 = vector.broadcast %cst_74 : f32 to vector<8x128xf32>
    %235 = arith.select %233, %231, %234 : vector<8x128xi1>, vector<8x128xf32>
    %c0_75 = arith.constant 0 : index
    %c0_76 = arith.constant 0 : index
    %236 = vector.load %arg6[%c0_75, %c0_76] : memref<8x128xf32, #tpu.memory_space<vmem>>, vector<8x128xf32>
    tpu.vector_store %arg6[%c0_75, %c0_76], %235 {strides = array<i32>} : memref<8x128xf32, #tpu.memory_space<vmem>>, vector<8x128xf32>,
    return
  }
}

</mosaic_0001>

<bundles_post_ra>
// kernel: nir_se_basic_block.1
= control target key start
LH: loop header
LB: loop body
LE: loop exit
PB: predicated region body
PF: predicated region fallthrough
CT: control target
= control target key end

     0   :  { %v680_v1 = vmov 0.0   ;;  %vm681_vm0 = vmmov 0   ;;  %s682_s25 = smov 127   ;;  %v683_v3 = vmov 0   ;;  %v26_v4 = vlaneseq  ;;  %s937_s0 = inlined_call_operand.vmem [shape: f32[8,128], index: 0, kind: input, shape index: {}, may-alias: {0,6}]   ;;  %s938_s5 = inlined_call_operand.vmem [shape: f32[8,8], index: 5, kind: input, shape index: {}]   ;;  %s939_s1 = inlined_call_operand.vmem [shape: bf16[8,24], index: 1, kind: input, shape index: {}]   ;;  %s940_s2 = inlined_call_operand.vmem [shape: bf16[8,24], index: 2, kind: input, shape index: {}]   ;;  %s941_s3 = inlined_call_operand.vmem [shape: bf16[2,8], index: 3, kind: input, shape index: {}]   ;;  %s942_s4 = inlined_call_operand.vmem [shape: bf16[8,2], index: 4, kind: input, shape index: {}]   ;;  %s943_s6 = inlined_call_operand.vmem [shape: f32[8,128], index: 6, kind: output, shape index: {}, may-alias: {0,6}]  }
   0x1   :  { %v731_v0 = vld [vmem:[%s937_s0] sm:$0xff]  ;;  %600 = vmatprep.subr.bf16.mxu1 %v680_v1  ;;  %604 = vmatprep.mubr.msk.bf16.mxu1 %vm681_vm0, %v680_v1  ;;  %s684_s0 = smov 1   ;;  %vm69_vm13 = vcmask 1043456   ;;  %vm79_vm15 = vcmask 195584   ;;  %v685_v37 = vmov 1   ;;  %v686_v48 = vmov 2  }
   0x2   :  { %v739_v2 = vld [vmem:[%s938_s5] sm:$0xff]  ;;  %56 = vrot.lane.b32.xlu0 %v731_v0, %s682_s25  ;;  %661 = vset.pattern.permute.xlu1 %v683_v3  ;;  %v27_v5 = vand.u32 127, %v26_v4  ;;  %v687_v56 = vmov 3  }
   0x3   :  { %76 = vperm.xlu1 %661, %v739_v2   ;;  %616 = vmatprep.subr.bf16.mxu0 %v680_v1  ;;  %v35_v28 = vld [vmem:[%s939_s1] sm:$0xf] }
   0x4   :  { %632 = vmatprep.mubr.msk.bf16.mxu0 %vm681_vm0, %v680_v1  ;;  %v751_v6 = vcvt.s32.f32 %v27_v5  ;;  %664 = vset.pattern.permute.xlu0 %v687_v56 }
   0x6   :  { %36 = vrot.lane.b32.xlu0 %v731_v0, %s684_s0  ;;  %v29_v7 = vadd.f32 0.5, %v751_v6  ;;  %vm34_vm2 = vcmp.lt.f32.partialorder %v751_v6, 32.0 }
   0x7   :  { %662 = vset.pattern.permute.xlu1 %v685_v37 }
   0x8   :  { %v30_v8 = vmul.f32 0.0625, %v29_v7 }
   0xa   :  { %v754_v9 = vfloor.f32 %v30_v8 }
   0xc   :  { %v32_v10 = vmul.f32 16.0, %v754_v9 }
   0xe   :  { %v33_v11 = vsub.f32 %v751_v6, %v32_v10 }
  0x10   :  { %v58_v12 = vadd.f32 1.0, %v33_v11  ;;  %vm48_vm1 = vcmp.ge.f32.partialorder %v33_v11, 0.0  ;;  %vm50_vm4 = vcmp.le.f32.partialorder %v33_v11, 15.0  ;;  %v38_v13 = vadd.f32 -1.0, %v33_v11  ;;  %v160_v11 = vld [vmem:[%s940_s2] sm:$0xf] }
  0x11   :  { %vm49_vm3 = vmand %vm34_vm2, %vm48_vm1 }
  0x12   :  { %vm59_vm5 = vcmp.ge.f32.partialorder %v58_v12, 0.0  ;;  %vm761_vm6 = vmand %vm49_vm3, %vm50_vm4  ;;  %vm61_vm8 = vcmp.le.f32.partialorder %v58_v12, 15.0  ;;  %vm39_vm9 = vcmp.ge.f32.partialorder %v38_v13, 0.0  ;;  %vm41_vm12 = vcmp.le.f32.partialorder %v38_v13, 15.0 }
  0x13   :  { %vm60_vm7 = vmand %vm34_vm2, %vm59_vm5  ;;  %v54_v15 = vsel %vm761_vm6, %v731_v0, 0.0 }
  0x14   :  { %vm770_vm10 = vmand %vm60_vm7, %vm61_vm8  ;;  %v55_v18 = vpack.c.bf16 %v54_v15, %v54_v15 }
  0x15   :  { %vm40_vm11 = vmand %vm34_vm2, %vm39_vm9 }
  0x16   :  { %vm778_vm14 = vmand %vm40_vm11, %vm41_vm12  ;;  %v68_v24 = vrot.slane %v55_v18, 4 }
  0x74   :  { %v57_v17 = vpop.permute.xlu0 %56 }
  0x75   :  { %v65_v19 = vsel %vm770_vm10, %v57_v17, 0.0 }
  0x76   :  { %v66_v20 = vpack.c.bf16 %v65_v19, %v65_v19 }
  0x78   :  { %v37_v22 = vpop.permute.xlu0 %36  ;;  %v84_v23 = vsel %vm69_vm13, %v66_v20, 0  ;;  %v688_v20 = vmov 4  }
  0x79   :  { %v45_v25 = vsel %vm778_vm14, %v37_v22, 0.0  ;;  %601 = vmatpush3.bf16.msra.mxu1 %v84_v23 }
  0x7a   :  { %v46_v26 = vpack.c.bf16 %v45_v25, %v45_v25  ;;  %602 = vmatprep.subr.bf16.mxu1 %v680_v1 }
  0x7c   :  { %v72_v27 = vsel %vm69_vm13, %v46_v26, %v68_v24 }
  0x7d   :  { %603 = vmatpush3.bf16.msra.mxu1 %v72_v27 }
  0x7e   :  { %608 = vmatprep.subr.bf16.mxu1 %v680_v1  ;;  %v77_v29 = vpop.permute.xlu1 %76 }
  0x80   :  { %605 = vmatmul.mubr.msk.bf16.vlgmr.msra.gmra.mxu1 %vm79_vm15, %v35_v28  ;;  %v689_v28 = vmov 5  }
  0x81   :  { %612 = vmatprep.mubr.msk.bf16.mxu1 %vm681_vm0, %v680_v1 }
 0x140   :  { %v120_v30 = vpop.f32.mrf.mxu1 }
 0x141   :  { %v121_v31 = vadd.f32 %v120_v30, %v77_v29  ;;  %v825_v29 = vshrl.u32 %v26_v4, 7 }
 0x142   :  { %v606_v32 = vpop.f32.mrf.mxu1 }
 0x143   :  { %v128_v33 = vsel %vm34_vm2, %v121_v31, 0.0  ;;  %v273_v32 = vadd.s32 112, %v825_v29 }
 0x144   :  { %129 = vadd.xlane.f32.xlu1 %v128_v33  ;;  %v123_v34 = vpop.f32.mrf.mxu1  ;;  %v132_v35 = vmul.f32 %v128_v33, %v128_v33  ;;  %v274_v33 = vadd.s32 120, %v825_v29 }
 0x145   :  { %v271_v34 = vadd.s32 96, %v825_v29 }
 0x146   :  { %133 = vadd.xlane.f32.xlu0 %v132_v35  ;;  %v607_v36 = vpop.f32.mrf.mxu1  ;;  %v272_v35 = vadd.s32 104, %v825_v29 }
 0x147   :  { %v269_v36 = vadd.s32 80, %v825_v29 }
 0x1cd   :  { %v130_v38 = vpop.xlane.xlu1 %129 }
 0x1ce   :  { %v131_v39 = vmul.f32 0.03125, %v130_v38  ;;  %v270_v38 = vadd.s32 88, %v825_v29 }
 0x1cf   :  { %v134_v40 = vpop.xlane.xlu0 %133 }
 0x1d0   :  { %v136_v41 = vmul.f32 %v131_v39, %v131_v39  ;;  %v135_v42 = vmul.f32 0.03125, %v134_v40  ;;  %v289_v40 = vcvt.s32.f32 %v273_v32 }
 0x1d2   :  { %v137_v43 = vsub.f32 %v135_v42, %v136_v41  ;;  %v290_v41 = vcvt.s32.f32 %v274_v33  ;;  %v287_v42 = vcvt.s32.f32 %v271_v34 }
 0x1d4   :  { %v138_v44 = vadd.f32 1e-05, %v137_v43  ;;  %v288_v43 = vcvt.s32.f32 %v272_v35 }
 0x1d6   :  { %672 = vrsqrt.f32 %v138_v44  ;;  %v285_v44 = vcvt.s32.f32 %v269_v36 }
 0x1e3   :  { %v673_v45 = vpop.eup %672 }
 0x1e4   :  { %v140_v46 = vmul.f32 %v673_v45, %v739_v2  ;;  %v286_v45 = vcvt.s32.f32 %v270_v38 }
 0x1e6   :  { %143 = vperm.xlu1 %662, %v140_v46   ;;  %v147_v47 = vmul.f32 %v140_v46, %v131_v39  ;;  %v267_v39 = vadd.s32 64, %v825_v29  ;;  %v268_v46 = vadd.s32 72, %v825_v29 }
 0x1e8   :  { %149 = vrot.lane.b32.xlu0 %v147_v47, %s684_s0  ;;  %v305_v47 = vadd.f32 0.5, %v289_v40 }
 0x1ea   :  { %663 = vset.pattern.permute.xlu1 %v686_v48  ;;  %v306_v48 = vadd.f32 0.5, %v290_v41 }
 0x1ec   :  { %v322_v56 = vmul.f32 0.0625, %v306_v48 }
 0x25a   :  { %v150_v49 = vpop.permute.xlu0 %149 }
 0x25b   :  { %v152_v50 = vsub.f32 %v739_v2, %v150_v49  ;;  %v303_v49 = vadd.f32 0.5, %v287_v42 }
 0x25d   :  { %155 = vperm.xlu1 %663, %v152_v50   ;;  %v283_v50 = vcvt.s32.f32 %v267_v39 }
 0x261   :  { %v144_v51 = vpop.permute.xlu1 %143  ;;  %666 = vset.pattern.permute.xlu1 %v689_v28 }
 0x262   :  { %v146_v52 = vmul.f32 %v144_v51, %v121_v31  ;;  %v304_v51 = vadd.f32 0.5, %v288_v43 }
 0x2d8   :  { %v156_v53 = vpop.permute.xlu1 %155 }
 0x2d9   :  { %v158_v54 = vadd.f32 %v156_v53, %v146_v52  ;;  %v301_v52 = vadd.f32 0.5, %v285_v44  ;;  %v302_v53 = vadd.f32 0.5, %v286_v45 }
 0x2db   :  { %v159_v55 = vmax.f32 %v158_v54, 0.0  ;;  %v284_v54 = vcvt.s32.f32 %v268_v46 }
 0x2dd   :  { %161 = vrot.lane.b32.xlu1 %v159_v55, %s684_s0  ;;  %167 = vrot.lane.b32.xlu0 %v159_v55, %s682_s25  ;;  %v165_v57 = vsel %vm761_vm6, %v159_v55, 0.0  ;;  %v321_v55 = vmul.f32 0.0625, %v305_v47 }
 0x2de   :  { %v166_v62 = vpack.c.bf16 %v165_v57, %v165_v57  ;;  %v319_v57 = vmul.f32 0.0625, %v303_v49 }
 0x2e0   :  { %v172_v8 = vrot.slane %v166_v62, 4  ;;  %v300_v62 = vadd.f32 0.5, %v284_v54 }
 0x2e1   :  { %178 = vperm.xlu0 %664, %v739_v2  }
 0x2e5   :  { %665 = vset.pattern.permute.xlu0 %v688_v20  ;;  %v265_v20 = vadd.s32 48, %v825_v29 }
 0x2e7   :  { %v281_v28 = vcvt.s32.f32 %v265_v20 }
 0x2e9   :  { %v297_v35 = vadd.f32 0.5, %v281_v28 }
 0x2eb   :  { %v313_v43 = vmul.f32 0.0625, %v297_v35 }
 0x2ed   :  { %v329_v47 = vfloor.f32 %v313_v43 }
 0x34f   :  { %v162_v58 = vpop.permute.xlu1 %161  ;;  %v168_v59 = vpop.permute.xlu0 %167 }
 0x350   :  { %v163_v60 = vsel %vm778_vm14, %v162_v58, 0.0  ;;  %v169_v61 = vsel %vm770_vm10, %v168_v59, 0.0  ;;  %v299_v58 = vadd.f32 0.5, %v283_v50  ;;  %v320_v59 = vmul.f32 0.0625, %v304_v51 }
 0x351   :  { %v170_v63 = vpack.c.bf16 %v169_v61, %v169_v61  ;;  %v164_v5 = vpack.c.bf16 %v163_v60, %v163_v60  ;;  %v317_v60 = vmul.f32 0.0625, %v301_v52  ;;  %v318_v61 = vmul.f32 0.0625, %v302_v53 }
 0x353   :  { %v185_v7 = vsel %vm69_vm13, %v170_v63, 0  ;;  %v175_v10 = vsel %vm69_vm13, %v164_v5, %v172_v8  ;;  %v337_v63 = vfloor.f32 %v321_v55  ;;  %v338_v5 = vfloor.f32 %v322_v56 }
 0x354   :  { %609 = vmatpush3.bf16.msra.mxu1 %v185_v7  ;;  %v335_v7 = vfloor.f32 %v319_v57  ;;  %v315_v8 = vmul.f32 0.0625, %v299_v58  ;;  %v260_v55 = vadd.s32 8, %v825_v29  ;;  %v275_v56 = vcvt.s32.f32 %v825_v29 }
 0x355   :  { %610 = vmatprep.subr.bf16.mxu1 %v680_v1  ;;  %vm353_vm1 = vcmp.eq.f32.partialorder %v337_v63, %v751_v6  ;;  %vm354_vm3 = vcmp.eq.f32.partialorder %v338_v5, %v751_v6 }
 0x356   :  { %vm841_vm4 = vcmp.eq.f32.partialorder %v335_v7, %v751_v6  ;;  %vm562_vm5 = vmpackc.low %vm354_vm3, %vm353_vm1  ;;  %v276_v57 = vcvt.s32.f32 %v260_v55  ;;  %v291_v58 = vadd.f32 0.5, %v275_v56 }
 0x358   :  { %611 = vmatpush3.bf16.msra.mxu1 %v175_v10  ;;  %v336_v10 = vfloor.f32 %v320_v59  ;;  %v292_v59 = vadd.f32 0.5, %v276_v57 }
 0x359   :  { %636 = vmatprep.subr.bf16.mxu1 %v680_v1 }
 0x35a   :  { %vm846_vm6 = vcmp.eq.f32.partialorder %v336_v10, %v751_v6 }
 0x35b   :  { %613 = vmatmul.mubr.msk.bf16.vlgmr.msra.gmra.mxu1 %vm79_vm15, %v160_v11  ;;  %v333_v11 = vfloor.f32 %v317_v60  ;;  %vm564_vm8 = vmpackc.low %vm846_vm6, %vm841_vm4  ;;  %vm345_vm15 = vcmp.eq.f32.partialorder %v329_v47, %v751_v6  ;;  %v307_v60 = vmul.f32 0.0625, %v291_v58 }
 0x35c   :  { %638 = vmatprep.mubr.msk.bf16.mxu1 %vm681_vm0, %v680_v1  ;;  %v179_v12 = vpop.permute.xlu0 %178 }
 0x35d   :  { %vm852_vm7 = vcmp.eq.f32.partialorder %v333_v11, %v751_v6 }
 0x41b   :  { %v221_v13 = vpop.f32.mrf.mxu1 }
 0x41c   :  { %v819_v14 = vadd.f32 %v221_v13, %v179_v12  ;;  %v334_v12 = vfloor.f32 %v318_v61  ;;  %v308_v61 = vmul.f32 0.0625, %v292_v59  ;;  %v691_v13 = vmov 7  }
 0x41d   :  { %v614_v15 = vpop.f32.mrf.mxu1 }
 0x41e   :  { %v227_v16 = vsel %vm34_vm2, %v819_v14, 0.0  ;;  %v316_v15 = vmul.f32 0.0625, %v300_v62  ;;  %vm865_vm9 = vcmp.eq.f32.partialorder %v334_v12, %v751_v6  ;;  %v323_v62 = vfloor.f32 %v307_v60 }
 0x41f   :  { %228 = vadd.xlane.f32.xlu1 %v227_v16  ;;  %v224_v17 = vpop.f32.mrf.mxu1  ;;  %v231_v18 = vmul.f32 %v227_v16, %v227_v16  ;;  %vm566_vm10 = vmpackc.low %vm865_vm9, %vm852_vm7  ;;  %v324_v63 = vfloor.f32 %v308_v61 }
 0x420   :  { %v331_v17 = vfloor.f32 %v315_v8 }
 0x421   :  { %232 = vadd.xlane.f32.xlu0 %v231_v18  ;;  %v615_v19 = vpop.f32.mrf.mxu1  ;;  %v690_v18 = vmov 1.0|1.0  }
 0x422   :  { %617 = vmatpush3.bf16.msk.msra.mxu0 %vm562_vm5, %v690_v18  ;;  %vm879_vm11 = vcmp.eq.f32.partialorder %v331_v17, %v751_v6 }
 0x423   :  { %618 = vmatprep.subr.bf16.mxu0 %v680_v1 }
 0x426   :  { %619 = vmatpush3.bf16.msk.msra.mxu0 %vm564_vm8, %v690_v18 }
 0x427   :  { %620 = vmatprep.subr.bf16.mxu0 %v680_v1 }
 0x42a   :  { %621 = vmatpush3.bf16.msk.msra.mxu0 %vm566_vm10, %v690_v18  ;;  %vm339_vm10 = vcmp.eq.f32.partialorder %v323_v62, %v751_v6 }
 0x42b   :  { %622 = vmatprep.subr.bf16.mxu0 %v680_v1 }
 0x4a8   :  { %v229_v21 = vpop.xlane.xlu1 %228 }
 0x4a9   :  { %v230_v22 = vmul.f32 0.03125, %v229_v21  ;;  %v266_v21 = vadd.s32 56, %v825_v29 }
 0x4aa   :  { %v233_v23 = vpop.xlane.xlu0 %232 }
 0x4ab   :  { %v235_v24 = vmul.f32 %v230_v22, %v230_v22  ;;  %v234_v25 = vmul.f32 0.03125, %v233_v23 }
 0x4ad   :  { %v236_v26 = vsub.f32 %v234_v25, %v235_v24  ;;  %v264_v24 = vadd.s32 40, %v825_v29  ;;  %v261_v25 = vadd.s32 16, %v825_v29 }
 0x4af   :  { %v237_v27 = vadd.f32 1e-05, %v236_v26  ;;  %v262_v26 = vadd.s32 24, %v825_v29  ;;  %v280_v32 = vcvt.s32.f32 %v264_v24  ;;  %v277_v33 = vcvt.s32.f32 %v261_v25 }
 0x4b1   :  { %674 = vrsqrt.f32 %v237_v27  ;;  %v332_v27 = vfloor.f32 %v316_v15  ;;  %v278_v34 = vcvt.s32.f32 %v262_v26  ;;  %v293_v40 = vadd.f32 0.5, %v277_v33 }
 0x4b3   :  { %v294_v41 = vadd.f32 0.5, %v278_v34  ;;  %vm884_vm12 = vcmp.eq.f32.partialorder %v332_v27, %v751_v6  ;;  %v309_v49 = vmul.f32 0.0625, %v293_v40 }
 0x4b4   :  { %vm568_vm14 = vmpackc.low %vm884_vm12, %vm879_vm11  ;;  %vm340_vm11 = vcmp.eq.f32.partialorder %v324_v63, %v751_v6 }
 0x4b5   :  { %v310_v50 = vmul.f32 0.0625, %v294_v41  ;;  %623 = vmatpush3.bf16.msk.msra.mxu0 %vm568_vm14, %v690_v18  ;;  %v325_v53 = vfloor.f32 %v309_v49  ;;  %vm576_vm12 = vmpackc.low %vm340_vm11, %vm339_vm10  ;;  %vm427_vm14 = vcmask 64512  }
 0x4b6   :  { %624 = vmatprep.subr.bf16.mxu0 %v680_v1 }
 0x4b7   :  { %v326_v54 = vfloor.f32 %v310_v50  ;;  %vm341_vm7 = vcmp.eq.f32.partialorder %v325_v53, %v751_v6 }
 0x4b9   :  { %vm342_vm8 = vcmp.eq.f32.partialorder %v326_v54, %v751_v6 }
 0x4ba   :  { %vm574_vm9 = vmpackc.low %vm342_vm8, %vm341_vm7 }
 0x4be   :  { %v675_v30 = vpop.eup %674 }
 0x4bf   :  { %v239_v31 = vmul.f32 %v675_v30, %v739_v2  ;;  %v282_v30 = vcvt.s32.f32 %v266_v21 }
 0x4c1   :  { %242 = vperm.xlu0 %665, %v239_v31   ;;  %v246_v4 = vmul.f32 %v239_v31, %v230_v22  ;;  %v263_v22 = vadd.s32 32, %v825_v29  ;;  %v298_v36 = vadd.f32 0.5, %v282_v30 }
 0x4c3   :  { %248 = vrot.lane.b32.xlu1 %v246_v4, %s684_s0  ;;  %v279_v31 = vcvt.s32.f32 %v263_v22  ;;  %v296_v4 = vadd.f32 0.5, %v280_v32  ;;  %v314_v44 = vmul.f32 0.0625, %v298_v36  ;;  %v692_v22 = vmov 6  }
 0x4c5   :  { %671 = vset.pattern.permute.xlu0 %v685_v37  ;;  %v295_v38 = vadd.f32 0.5, %v279_v31  ;;  %v312_v46 = vmul.f32 0.0625, %v296_v4  ;;  %v330_v48 = vfloor.f32 %v314_v44 }
 0x4c7   :  { %v311_v45 = vmul.f32 0.0625, %v295_v38  ;;  %vm346_vm1 = vcmp.eq.f32.partialorder %v330_v48, %v751_v6  ;;  %v328_v52 = vfloor.f32 %v312_v46 }
 0x4c8   :  { %vm570_vm3 = vmpackc.low %vm346_vm1, %vm345_vm15  ;;  %vm535_vm15 = vcmp.eq.f32.partialorder %v754_v9, 0.0  ;;  %vm544_vm1 = vcmp.eq.f32.partialorder %v754_v9, 1.0 }
 0x4c9   :  { %v327_v51 = vfloor.f32 %v311_v45  ;;  %vm344_vm5 = vcmp.eq.f32.partialorder %v328_v52, %v751_v6  ;;  %625 = vmatpush3.bf16.msk.msra.mxu0 %vm570_vm3, %v690_v18 }
 0x4ca   :  { %626 = vmatprep.subr.bf16.mxu0 %v680_v1 }
 0x4cb   :  { %vm343_vm4 = vcmp.eq.f32.partialorder %v327_v51, %v751_v6 }
 0x4cc   :  { %vm572_vm6 = vmpackc.low %vm344_vm5, %vm343_vm4 }
 0x4cd   :  { %627 = vmatpush3.bf16.msk.msra.mxu0 %vm572_vm6, %v690_v18 }
 0x4ce   :  { %628 = vmatprep.subr.bf16.mxu0 %v680_v1 }
 0x4d1   :  { %629 = vmatpush3.bf16.msk.msra.mxu0 %vm574_vm9, %v690_v18 }
 0x4d2   :  { %630 = vmatprep.subr.bf16.mxu0 %v680_v1 }
 0x4d5   :  { %631 = vmatpush3.bf16.msk.msra.mxu0 %vm576_vm12, %v690_v18 }
 0x535   :  { %v249_v5 = vpop.permute.xlu1 %248 }
 0x536   :  { %v251_v7 = vsub.f32 %v739_v2, %v249_v5 }
 0x538   :  { %254 = vperm.xlu1 %666, %v251_v7  }
 0x53c   :  { %v243_v8 = vpop.permute.xlu0 %242  ;;  %667 = vset.pattern.permute.xlu1 %v691_v13 }
 0x53d   :  { %v245_v29 = vmul.f32 %v243_v8, %v819_v14  ;;  %424 = vperm.xlu1 %667, %v739_v2   ;;  %v421_v14 = vld [vmem:[%s941_s3] sm:$0x1] }
 0x541   :  { %668 = vset.pattern.permute.xlu1 %v692_v22 }
 0x542   :  { %478 = vperm.xlu1 %668, %v739_v2  }
 0x546   :  { %669 = vset.pattern.permute.xlu1 %v683_v3 }
 0x5b3   :  { %v255_v10 = vpop.permute.xlu1 %254 }
 0x5b4   :  { %v257_v11 = vadd.f32 %v255_v10, %v245_v29 }
 0x5b6   :  { %v379_v12 = vpack.c.bf16 %v257_v11, %v257_v11 }
 0x5b8   :  { %633 = vmatmul.mubr.bf16.vlgmr.msra.gmra.mxu0 %v379_v12  ;;  %v425_v23 = vpop.permute.xlu1 %424 }
 0x5bd   :  { %v479_v2 = vpop.permute.xlu1 %478 }
 0x678   :  { %v414_v15 = vpop.f32.mrf.mxu0 }
 0x679   :  { %v420_v16 = vmul.f32 0.0625, %v414_v15 }
 0x67a   :  { %v634_v17 = vpop.f32.mrf.mxu0 }
 0x67b   :  { %v422_v19 = vpack.c.bf16 %v420_v16, %v420_v16 }
 0x67c   :  { %v417_v20 = vpop.f32.mrf.mxu0 }
 0x67d   :  { %v432_v18 = vsel %vm69_vm13, %v422_v19, 0  ;;  %vm485_vm13 = vcmask 1040384  }
 0x67e   :  { %v635_v21 = vpop.f32.mrf.mxu0  ;;  %637 = vmatpush3.bf16.msra.mxu1 %v432_v18 }
 0x67f   :  { %642 = vmatprep.subr.bf16.mxu1 %v680_v1 }
 0x681   :  { %639 = vmatmul.mubr.msk.bf16.vlgmr.msra.gmra.mxu1 %vm427_vm14, %v421_v14 }
 0x682   :  { %644 = vmatprep.mubr.msk.bf16.mxu1 %vm681_vm0, %v680_v1  ;;  %v475_v1 = vld [vmem:[%s942_s4] sm:$0xf]  ;;  %vm481_vm0 = vcmask 15360  }
 0x741   :  { %v468_v24 = vpop.f32.mrf.mxu1 }
 0x742   :  { %v469_v25 = vadd.f32 %v468_v24, %v425_v23 }
 0x743   :  { %v640_v26 = vpop.f32.mrf.mxu1 }
 0x744   :  { %v474_v27 = vmax.f32 %v469_v25, 0.0 }
 0x745   :  { %v471_v28 = vpop.f32.mrf.mxu1 }
 0x746   :  { %v476_v30 = vpack.c.bf16 %v474_v27, %v474_v27 }
 0x747   :  { %v641_v31 = vpop.f32.mrf.mxu1 }
 0x748   :  { %v487_v32 = vsel %vm485_vm13, %v476_v30, 0 }
 0x749   :  { %643 = vmatpush3.bf16.msra.mxu1 %v487_v32 }
 0x74c   :  { %645 = vmatmul.mubr.msk.bf16.vlgmr.msra.gmra.mxu1 %vm481_vm0, %v475_v1 }
 0x80c   :  { %v523_v33 = vpop.f32.mrf.mxu1 }
 0x80d   :  { %v524_v3 = vadd.f32 %v523_v33, %v479_v2 }
 0x80e   :  { %v646_v34 = vpop.f32.mrf.mxu1 }
 0x80f   :  { %v580_v35 = vmul.f32 -1.442695, %v524_v3 }
 0x810   :  { %v526_v36 = vpop.f32.mrf.mxu1 }
 0x811   :  { %676 = vpow2.f32 %v580_v35 }
 0x812   :  { %v647_v38 = vpop.f32.mrf.mxu1 }
 0x81e   :  { %v677_v39 = vpop.eup %676 }
 0x81f   :  { %v532_v4 = vadd.f32 1.0, %v677_v39 }
 0x821   :  { %678 = vrcp.f32 %v532_v4 }
 0x82e   :  { %v679_v40 = vpop.eup %678 }
 0x82f   :  { %540 = vperm.xlu1 %669, %v679_v40  }
 0x833   :  { %670 = vset.pattern.permute.xlu1 %v685_v37 }
 0x834   :  { %548 = vperm.xlu1 %670, %v679_v40  }
 0x8aa   :  { %v541_v41 = vpop.permute.xlu1 %540 }
 0x8ab   :  { %v543_v42 = vsel %vm535_vm15, %v541_v41, 0.0 }
 0x8af   :  { %v549_v43 = vpop.permute.xlu1 %548 }
 0x8b0   :  { %v551_v44 = vsel %vm544_vm1, %v549_v43, %v543_v42 }
 0x8b1   :  { %v552_v45 = vmul.f32 %v551_v44, %v257_v11 }
 0x8b3   :  { %v553_v46 = vadd.f32 %v552_v45, %v731_v0 }
 0x8b5   :  { %v554_v47 = vsel %vm34_vm2, %v553_v46, 0.0 }
 0x8b6   :  { %555 = vst [vmem:[%s943_s6] sm:$0xff] %v554_v47 }

</bundles_post_ra>
